<compile_context>
chip_gen: v5e
topology: v5e:2x2
jax: 0.10.0
libtpu: 0.0.40
codegen_flags: <defaults>
</compile_context>

<pallas_src>
import jax
import jax.numpy as jnp
from jax.experimental import pallas as pl
from jax.experimental.pallas import tpu as pltpu

_LANES = 128
_SQRT_2_OVER_PI = 0.7978845608028654  # sqrt(2/pi)


def _gelu_kernel(x_ref, o_ref):
    # Upcast to f32 for the polynomial + tanh (EUP), cast back on the store.
    x = x_ref[...].astype(jnp.float32)
    inner = _SQRT_2_OVER_PI * (x + 0.044715 * (x * x * x))
    y = 0.5 * x * (1.0 + jnp.tanh(inner))
    o_ref[...] = y.astype(o_ref.dtype)


def _sublane_for_dtype(dtype) -> int:
    itemsize = jnp.dtype(dtype).itemsize
    return {4: 8, 2: 16, 1: 32}.get(itemsize, 8)


def _round_up(x: int, m: int) -> int:
    return ((x + m - 1) // m) * m


def _choose_block_rows(rows: int, sublane: int, max_block_rows: int) -> int:
    """Big tiles for roofline, but enough grid steps for pipelining / 2 TCs."""
    # `rows` is always a multiple of `sublane` (wrapper pads to that granule),
    # and `max_block_rows` is a multiple of 32, so the (8,128) block-shape
    # divisibility constraint is always satisfied.
    if rows <= max_block_rows:
        return rows  # single block == full extent
    br = max_block_rows
    target_steps, min_br = 8, 1024
    if rows >= target_steps * min_br:
        steps = -(-rows // br)
        if steps < target_steps:
            br = -(-rows // target_steps)
            br = max(_round_up(br, sublane), min_br)
    return br


def gelu_pallas(x: jax.Array, *, max_block_rows: int = 4096) -> jax.Array:
    """tanh-approx GELU, elementwise, any shape / float dtype."""
    orig_shape = x.shape
    orig_dtype = x.dtype
    n = x.size
    if n == 0:
        return x

    sublane = _sublane_for_dtype(orig_dtype)
    granule = sublane * _LANES

    x_flat = jnp.ravel(x)
    if n % granule == 0:
        padded = n  # fast path: zero-copy reshape, no pad, no tail slice
    else:
        padded = _round_up(n, granule)
        x_flat = jnp.pad(x_flat, (0, padded - n))
    rows = padded // _LANES
    x2d = x_flat.reshape(rows, _LANES)

    block_rows = _choose_block_rows(rows, sublane, max_block_rows)
    grid_steps = -(-rows // block_rows)

    tile_bytes = block_rows * _LANES * jnp.dtype(orig_dtype).itemsize
    # 2x double-buffered input + 2x double-buffered output + headroom,
    # capped so it is safe on every generation (v5e/v6e/v7x).
    vmem_limit = min(32 << 20, max(16 << 20, 4 * tile_bytes + (4 << 20)))

    out2d = pl.pallas_call(
        _gelu_kernel,
        out_shape=jax.ShapeDtypeStruct((rows, _LANES), orig_dtype),
        grid_spec=pltpu.PrefetchScalarGridSpec(
            num_scalar_prefetch=0,
            grid=(grid_steps,),
            in_specs=[pl.BlockSpec((block_rows, _LANES), lambda i: (i, 0))],
            out_specs=pl.BlockSpec((block_rows, _LANES), lambda i: (i, 0)),
        ),
        compiler_params=pltpu.CompilerParams(
            dimension_semantics=("parallel",),
            vmem_limit_bytes=vmem_limit,
        ),
    )(x2d)

    if padded == n:
        return out2d.reshape(orig_shape)
    return out2d.reshape(-1)[:n].reshape(orig_shape)


def _gelu_ref(x):
    # pure-JAX reference identical to the PyTorch forward
    return 0.5 * x * (1.0 + jnp.tanh(jnp.sqrt(2.0 / jnp.pi) * (x + 0.044715 * x**3)))


if __name__ == "__main__":
    key = jax.random.PRNGKey(0)
    x = jax.random.normal(key, (2, 4, 16, 16), dtype=jnp.float32)  # NCHW

    y = jax.block_until_ready(gelu_pallas(x))
    y_ref = _gelu_ref(x)
    assert y.shape == x.shape and y.dtype == x.dtype
    assert jnp.max(jnp.abs(y - y_ref)) < 1e-5

    # non-divisible (padded tail) path
    x_odd = jax.random.normal(jax.random.PRNGKey(1), (3, 5, 7), dtype=jnp.float32)
    y_odd = jax.block_until_ready(gelu_pallas(x_odd))
    assert jnp.max(jnp.abs(y_odd - _gelu_ref(x_odd))) < 1e-5

    # bf16 I/O path (math in f32 inside the kernel)
    x_bf = jax.random.normal(jax.random.PRNGKey(2), (4, 256), dtype=jnp.bfloat16)
    y_bf = jax.block_until_ready(gelu_pallas(x_bf))
    err = jnp.max(jnp.abs(y_bf.astype(jnp.float32)
                          - _gelu_ref(x_bf.astype(jnp.float32))))
    assert y_bf.dtype == jnp.bfloat16 and err < 3e-2

    print("KERNEL_OK")
</pallas_src>

<mosaic_0001>
module attributes {stable_mosaic.version = 11 : i64} {
  func.func @_gelu_kernel(%arg0: i32, %arg1: memref<16x128xf32, #tpu.memory_space<vmem>>, %arg2: memref<16x128xf32, #tpu.memory_space<vmem>>) attributes {dimension_semantics = [#tpu.dimension_semantics<parallel>], iteration_bounds = array<i64: 1>, scalar_prefetch = 0 : i64, scratch_operands = 0 : i64, tpu.core_type = #tpu.core_type<tc>, window_params = [{transform_indices = @transform_0, window_bounds = array<i64: 16, 128>}, {transform_indices = @transform_1, window_bounds = array<i64: 16, 128>}]} {
    %c0 = arith.constant 0 : index
    %c0_0 = arith.constant 0 : index
    %0 = vector.load %arg1[%c0, %c0_0] : memref<16x128xf32, #tpu.memory_space<vmem>>, vector<16x128xf32>
    %1 = arith.mulf %0, %0 : vector<16x128xf32>
    %2 = arith.mulf %1, %0 : vector<16x128xf32>
    %cst = arith.constant 4.471500e-02 : f32
    %3 = vector.broadcast %cst : f32 to vector<16x128xf32>
    %4 = arith.mulf %3, %2 : vector<16x128xf32>
    %5 = arith.addf %0, %4 : vector<16x128xf32>
    %cst_1 = arith.constant 0.797884583 : f32
    %6 = vector.broadcast %cst_1 : f32 to vector<16x128xf32>
    %7 = arith.mulf %6, %5 : vector<16x128xf32>
    %cst_2 = arith.constant 5.000000e-01 : f32
    %8 = vector.broadcast %cst_2 : f32 to vector<16x128xf32>
    %9 = arith.mulf %8, %0 : vector<16x128xf32>
    %10 = math.tanh %7 : vector<16x128xf32>
    %cst_3 = arith.constant 1.000000e+00 : f32
    %11 = vector.broadcast %cst_3 : f32 to vector<16x128xf32>
    %12 = arith.addf %11, %10 : vector<16x128xf32>
    %13 = arith.mulf %9, %12 : vector<16x128xf32>
    %c0_4 = arith.constant 0 : index
    %c0_5 = arith.constant 0 : index
    %14 = vector.load %arg2[%c0_4, %c0_5] : memref<16x128xf32, #tpu.memory_space<vmem>>, vector<16x128xf32>
    tpu.vector_store %arg2[%c0_4, %c0_5], %13 {strides = array<i32>} : memref<16x128xf32, #tpu.memory_space<vmem>>, vector<16x128xf32>,
    return
  }
  func.func @transform_0(%arg0: i32) -> (i32, i32) {
    %c0_i32 = arith.constant 0 : i32
    %c0_i32_0 = arith.constant 0 : i32
    return %arg0, %c0_i32 : i32, i32
  }
  func.func @transform_1(%arg0: i32) -> (i32, i32) {
    %c0_i32 = arith.constant 0 : i32
    %c0_i32_0 = arith.constant 0 : i32
    return %arg0, %c0_i32 : i32, i32
  }
}

</mosaic_0001>

<bundles_post_ra>
// kernel: tpu_custom_call.1
= control target key start
LH: loop header
LB: loop body
LE: loop exit
PB: predicated region body
PF: predicated region fallthrough
CT: control target
= control target key end

     0   :  { %6 = vsyncpa [#allocation3], 0  ;;  %s152_s0 = inlined_call_operand.hbm [shape: f32[16,128], index: 0, kind: input, shape index: {}]   ;;  %s153_s1 = inlined_call_operand.hbm [shape: f32[16,128], index: 1, kind: output, shape index: {}]  }
   0x1   :  { %7 = vsyncpa [#allocation4], 0  ;;  %s12_s8 = sshll.u32 %s152_s0, 4  ;;  %s126_s9 = smov [#allocation2]   ;;  %s13_s8 = int_to_ptr.hbm [resolvable:$true] %s12_s8 }
   0x2   :  { %s14_s10 = sshll.u32 %s126_s9, 4  ;;  %s127_s11 = smov 128   ;;  %s15_s10 = int_to_ptr.vmem [resolvable:$true] %s14_s10 }
   0x3   :  { %s128_s12 = smov 8  }
   0x4   :  { %20 = dma.hbm_to_vmem [thread:$0]  %s13_s8, 256, %s15_s10, [#allocation3], %s127_s11, %s127_s11, %s128_s12  }
   0x5   :  { %122 = dma.done.wait [#allocation3], 256  }
   0x6   :  { %123 = vsyncadd [#allocation3], 4294967040  ;;  %v25_v0 = vld [vmem:[#allocation2] sm:$0xff]  ;;  %v26_v1 = vld [vmem:[#allocation2 + $0x8] sm:$0xff]  ;;  %s129_s0 = smov [#allocation5]   ;;  %s53_s16 = sshll.u32 %s153_s1, 4  ;;  %s54_s16 = int_to_ptr.hbm [resolvable:$true] %s53_s16 }
   0x7   :  { %v27_v2 = vmul.f32 %v25_v0, %v25_v0  ;;  %v28_v3 = vmul.f32 %v26_v1, %v26_v1  ;;  %v37_v12 = vmul.f32 0.5, %v25_v0  ;;  %v38_v14 = vmul.f32 0.5, %v26_v1  ;;  %s51_s13 = sshll.u32 %s129_s0, 4  ;;  %s52_s13 = int_to_ptr.vmem [resolvable:$true] %s51_s13 }
   0x9   :  { %v29_v4 = vmul.f32 %v27_v2, %v25_v0  ;;  %v30_v5 = vmul.f32 %v28_v3, %v26_v1 }
   0xb   :  { %v31_v6 = vmul.f32 0.044715, %v29_v4  ;;  %v32_v7 = vmul.f32 0.044715, %v30_v5 }
   0xd   :  { %v33_v8 = vadd.f32 %v31_v6, %v25_v0  ;;  %v34_v9 = vadd.f32 %v32_v7, %v26_v1 }
   0xf   :  { %v35_v10 = vmul.f32 0.7978846, %v33_v8  ;;  %v36_v11 = vmul.f32 0.7978846, %v34_v9 }
  0x11   :  { %70 = vtanh.f32 %v35_v10 }
  0x12   :  { %72 = vtanh.f32 %v36_v11 }
  0x17   :  { %v71_v13 = vpop.eup %70 }
  0x18   :  { %v73_v15 = vpop.eup %72  ;;  %v41_v16 = vadd.f32 1.0, %v71_v13 }
  0x19   :  { %v42_v17 = vadd.f32 1.0, %v73_v15 }
  0x1a   :  { %v43_v18 = vmul.f32 %v41_v16, %v37_v12 }
  0x1b   :  { %v44_v19 = vmul.f32 %v42_v17, %v38_v14 }
  0x1c   :  { %45 = vst [vmem:[#allocation5] sm:$0xff] %v43_v18 }
  0x1d   :  { %46 = vst [vmem:[#allocation5 + $0x8] sm:$0xff] %v44_v19 }
  0x1e   :  { %59 = dma.vmem_to_hbm [thread:$0]  %s52_s13, 256, %s54_s16, [#allocation4], %s127_s11, %s127_s11, %s128_s12  }
  0x1f   :  { %124 = dma.done.wait [#allocation4], 256  }
  0x20   :  { %125 = vsyncadd [#allocation4], 4294967040 }
  0x21   :  { %64 = vsyncpa [#allocation3], 1 }
  0x22   :  { %65 = vsyncpa [#allocation4], 1 }

</bundles_post_ra>
